<compile_context>
chip_gen: v7x
topology: tpu7x:2x2x1
jax: 0.10.0
libtpu: 0.0.40
codegen_flags: <defaults>
</compile_context>

<pallas_src>
import jax
import jax.numpy as jnp
from jax.experimental import pallas as pl
from jax.experimental.pallas import tpu as pltpu

LANE = 128


def sum_mix_kernel(w_ref, y_ref, o_ref):
    """w_ref: (m, 1, 1) f32, y_ref: (m, TR, 128) any float dtype, o_ref: (TR, 128) f32.

    Per (row, lane) column b:
        o[b] = max_k y[k, b] + log( sum_k w[k] * exp(y[k, b] - max_k y[k, b]) )
    which equals logsumexp_k(log w[k] + y[k, b]).
    """
    y = y_ref[...].astype(jnp.float32)                    # upcast in-register (no HBM pass)
    ymax = jnp.max(y, axis=0, keepdims=True)              # (1, TR, 128): m-1 VPU maxes
    p = jnp.exp(y - ymax)                                 # EUP, per-element
    s = jnp.sum(w_ref[...] * p, axis=0)                   # (TR, 128): m FMAs
    zmax = ymax[0]
    # Guard the all -inf column case so we return -inf (like torch.logsumexp),
    # not NaN.  Costs one VPU select on the (TR, 128) output only.
    o_ref[...] = jnp.where(zmax == -jnp.inf, -jnp.inf, zmax + jnp.log(s))


def _round_up(x, k):
    return ((x + k - 1) // k) * k


def sum_forward(ys, W, *, target_block_bytes=4 * 1024 * 1024):
    """ys: (m, B) stacked submodel outputs (any float dtype), W: (m-1,). Returns (B,) f32."""
    m, B = ys.shape
    assert W.shape == (m - 1,)

    # Hoisted: mixture weights computed exactly once in the wrapper (plain
    # softmax; the kernel folds the log into the final log(sum)).
    w = jax.nn.softmax(
        jnp.concatenate([W.astype(jnp.float32), jnp.zeros((1,), jnp.float32)], axis=0)
    ).reshape(m, 1, 1)

    # Batch on the lane axis.  Pad only when B is not a multiple of 128 (tiny
    # demo shapes); for production-sized, lane-aligned B this is a free
    # contiguous reshape and no extra HBM pass is made over ys.
    Bp = _round_up(B, LANE)
    if Bp != B:
        ys = jnp.pad(ys, ((0, 0), (0, Bp - B)))  # padded lanes sliced off below
    R = Bp // LANE
    ys3 = ys.reshape(m, R, LANE)                 # (m, rows, 128), contiguous view

    # Tile the row axis so each grid step streams ~target_block_bytes of ys.
    itemsize = ys3.dtype.itemsize
    max_rows = max(8, (target_block_bytes // (m * LANE * itemsize)) // 8 * 8)
    if R <= 8:
        tile_rows = R                            # full-extent block (legal for any R)
    else:
        # Multiple of 8 (layout rule), and never a single giant block when the
        # batch is large enough — keep >=2 grid steps so both v7x TCs get work.
        tile_rows = min(max_rows, _round_up((R + 1) // 2, 8))
    grid = (pl.cdiv(R, tile_rows),)              # ragged last block is fine: the
                                                 # reduction is strictly per-column and
                                                 # OOB rows map only to masked OOB stores.

    # TODO(synk): the torch module's host-side NaN check + pdb.set_trace() debug
    # branch has no in-kernel equivalent; omitted.

    out = pl.pallas_call(
        sum_mix_kernel,
        out_shape=jax.ShapeDtypeStruct((R, LANE), jnp.float32),
        grid=grid,
        in_specs=[
            pl.BlockSpec((m, 1, 1), lambda i: (0, 0, 0)),            # weights: fetched once
            pl.BlockSpec((m, tile_rows, LANE), lambda i: (0, i, 0)),  # ys: tiled along rows
        ],
        out_specs=pl.BlockSpec((tile_rows, LANE), lambda i: (i, 0)),
        compiler_params=pltpu.CompilerParams(
            dimension_semantics=("parallel",),        # megacore-shardable batch axis
            vmem_limit_bytes=32 * 1024 * 1024,        # safe on v7x (64 MiB VMEM); v6e/v5e
                                                      # could go higher / Buffered(3)
            allow_input_fusion=[False, True],         # let XLA fuse ys's producer in
        ),
    )(w, ys3)
    return out.reshape(Bp)[:B]


if __name__ == "__main__":
    key = jax.random.PRNGKey(0)
    n, m, B = 8, 4, 16  # feature dim, number of models, batch
    k_w, k_x, k_t, k_b = jax.random.split(key, 4)

    W = jax.random.normal(k_w, (m - 1,), dtype=jnp.float32)        # nn.Parameter W
    x = jax.random.normal(k_x, (B, n), dtype=jnp.float32)          # module input
    theta = jax.random.normal(k_t, (m, n), dtype=jnp.float32) / jnp.sqrt(n)
    bias = jax.random.normal(k_b, (m,), dtype=jnp.float32)

    # TODO(synk): self.models are arbitrary nn.Modules; here they are simple
    # linear scorers evaluated in plain JAX — only the mixture step
    # (softmax weights + logsumexp over models) is fused in the Pallas kernel.
    # allow_input_fusion above lets XLA fuse this producer into the call when
    # it can, avoiding ys's HBM round-trip.
    ys = jnp.einsum("bn,mn->mb", x, theta) + bias[:, None]         # (m, B) stacked outputs

    out = jax.block_until_ready(sum_forward(ys, W))

    # pure-JAX reference of the torch forward
    logw_ref = jnp.log(jax.nn.softmax(jnp.concatenate([W, jnp.zeros((1,), jnp.float32)])))
    ref = jax.scipy.special.logsumexp(logw_ref[:, None] + ys, axis=0)
    assert out.shape == (B,)
    assert jnp.allclose(out, ref, atol=1e-5, rtol=1e-5), (out, ref)

    print("KERNEL_OK")
</pallas_src>

<mosaic_0001>
module attributes {stable_mosaic.version = 11 : i64} {
  func.func @sum_mix_kernel(%arg0: i32, %arg1: memref<4x1x1xf32, #tpu.memory_space<vmem>>, %arg2: memref<4x1x128xf32, #tpu.memory_space<vmem>>, %arg3: memref<1x128xf32, #tpu.memory_space<vmem>>) attributes {dimension_semantics = [#tpu.dimension_semantics<parallel>], iteration_bounds = array<i64: 1>, scalar_prefetch = 0 : i64, scratch_operands = 0 : i64, tpu.core_type = #tpu.core_type<tc>, window_params = [{pipeline_mode = #tpu.pipeline_mode<synchronous>, transform_indices = @transform_0, window_bounds = array<i64: 4, 1, 1>}, {transform_indices = @transform_1, window_bounds = array<i64: 4, 1, 128>}, {transform_indices = @transform_2, window_bounds = array<i64: 1, 128>}]} {
    %c0 = arith.constant 0 : index
    %c0_0 = arith.constant 0 : index
    %c0_1 = arith.constant 0 : index
    %0 = vector.load %arg2[%c0, %c0_0, %c0_1] : memref<4x1x128xf32, #tpu.memory_space<vmem>>, vector<4x1x128xf32>
    %cst = arith.constant dense<0xFF800000> : vector<1x128xf32>
    %1 = vector.multi_reduction <maximumf>, %0, %cst [0] : vector<4x1x128xf32> to vector<1x128xf32>
    %2 = vector.shape_cast %1 : vector<1x128xf32> to vector<1x1x128xf32>
    %3 = vector.broadcast %2 : vector<1x1x128xf32> to vector<4x1x128xf32>
    %4 = arith.subf %0, %3 : vector<4x1x128xf32>
    %5 = math.exp %4 : vector<4x1x128xf32>
    %c0_2 = arith.constant 0 : index
    %c0_3 = arith.constant 0 : index
    %c0_4 = arith.constant 0 : index
    %6 = vector.load %arg1[%c0_2, %c0_3, %c0_4] : memref<4x1x1xf32, #tpu.memory_space<vmem>>, vector<4x1x1xf32>
    %7 = vector.broadcast %6 : vector<4x1x1xf32> to vector<4x1x128xf32>
    %8 = arith.mulf %7, %5 : vector<4x1x128xf32>
    %cst_5 = arith.constant dense<0.000000e+00> : vector<1x128xf32>
    %9 = vector.multi_reduction <add>, %8, %cst_5 [0] : vector<4x1x128xf32> to vector<1x128xf32>
    %10 = vector.shape_cast %2 : vector<1x1x128xf32> to vector<1x128xf32>
    %cst_6 = arith.constant 0xFF800000 : f32
    %11 = vector.broadcast %cst_6 : f32 to vector<1x128xf32>
    %12 = arith.cmpf oeq, %10, %11 : vector<1x128xf32>
    %13 = math.log %9 : vector<1x128xf32>
    %14 = arith.addf %10, %13 : vector<1x128xf32>
    %cst_7 = arith.constant 0xFF800000 : f32
    %15 = vector.broadcast %cst_7 : f32 to vector<1x128xf32>
    %16 = arith.select %12, %15, %14 : vector<1x128xi1>, vector<1x128xf32>
    %c0_8 = arith.constant 0 : index
    %c0_9 = arith.constant 0 : index
    %17 = vector.load %arg3[%c0_8, %c0_9] : memref<1x128xf32, #tpu.memory_space<vmem>>, vector<1x128xf32>
    tpu.vector_store %arg3[%c0_8, %c0_9], %16 {strides = array<i32>} : memref<1x128xf32, #tpu.memory_space<vmem>>, vector<1x128xf32>,
    return
  }
  func.func @transform_0(%arg0: i32) -> (i32, i32, i32) {
    %c0_i32 = arith.constant 0 : i32
    %c0_i32_0 = arith.constant 0 : i32
    %c0_i32_1 = arith.constant 0 : i32
    %c0_i32_2 = arith.constant 0 : i32
    return %c0_i32, %c0_i32_0, %c0_i32_1 : i32, i32, i32
  }
  func.func @transform_1(%arg0: i32) -> (i32, i32, i32) {
    %c0_i32 = arith.constant 0 : i32
    %c0_i32_0 = arith.constant 0 : i32
    %c0_i32_1 = arith.constant 0 : i32
    return %c0_i32, %arg0, %c0_i32_0 : i32, i32, i32
  }
  func.func @transform_2(%arg0: i32) -> (i32, i32) {
    %c0_i32 = arith.constant 0 : i32
    %c0_i32_0 = arith.constant 0 : i32
    return %arg0, %c0_i32 : i32, i32
  }
}

</mosaic_0001>

<bundles_post_ra>
// kernel: tpu_custom_call.1
= control target key start
LH: loop header
LB: loop body
LE: loop exit
PB: predicated region body
PF: predicated region fallthrough
CT: control target
= control target key end

     0   :  { %v149_v2 = vmov 0   ;;  %s202_s0 = inlined_call_operand.vmem [shape: f32[4,1,1], index: 0, kind: input, shape index: {}]   ;;  %s203_s1 = inlined_call_operand.vmem [shape: f32[4,1,128], index: 1, kind: input, shape index: {}]   ;;  %s204_s2 = inlined_call_operand.hbm [shape: f32[1,128], index: 2, kind: output, shape index: {}]  }
   0x1   :  { %v41_v0 = vld [vmem:[%s202_s0 + $0x2] sm:$0x1]  ;;  %v39_v1 = vld [vmem:[%s202_s0] sm:$0x1]  ;;  %114 = vset.pattern.permute.xlu1 %v149_v2  ;;  %113 = vset.pattern.permute.xlu0 %v149_v2  ;;  %v42_v3 = vld [vmem:[%s202_s0 + $0x3] sm:$0x1] }
   0x2   :  { %63 = vperm.xlu1 %114, %v41_v0   ;;  %45 = vperm.xlu0 %113, %v39_v1   ;;  %v40_v4 = vld [vmem:[%s202_s0 + $0x1] sm:$0x1] }
   0x3   :  { %7 = vsyncpa [#allocation3], 0  ;;  %v16_v5 = vlaneseq  ;;  %v12_v6 = vld [vmem:[%s203_s1] sm:$0x1]  ;;  %v13_v7 = vld [vmem:[%s203_s1 + $0x1] sm:$0x1] }
   0x4   :  { %v14_v8 = vld [vmem:[%s203_s1 + $0x2] sm:$0x1]  ;;  %v15_v9 = vld [vmem:[%s203_s1 + $0x3] sm:$0x1]  ;;  %vm83_vm1 = vcmask 1040384   ;;  %s150_s0 = smov [#allocation2]  }
   0x5   :  { %vm18_vm0 = vcmp.lt.s32.totalorder %v16_v5, 128  ;;  %v49_v25 = vshrl.u32 %v16_v5, 7  ;;  %s103_s1 = sshll.u32 %s150_s0, 4  ;;  %s104_s1 = int_to_ptr.vmem [resolvable:$true] %s103_s1 }
   0x6   :  { %72 = vperm.xlu1 %114, %v42_v3   ;;  %54 = vperm.xlu0 %113, %v40_v4   ;;  %v20_v10 = vsel %vm18_vm0, %v12_v6, -inf  ;;  %v21_v11 = vsel %vm18_vm0, %v13_v7, -inf  ;;  %v22_v12 = vsel %vm18_vm0, %v14_v8, -inf  ;;  %v23_v13 = vsel %vm18_vm0, %v15_v9, -inf  ;;  %s125_s25 = scalar_lea.vmem %s104_s1, 16  ;;  %s129_s26 = scalar_lea.vmem %s104_s1, 32 }
   0x7   :  { %v24_v14 = vmax.f32 %v20_v10, %v21_v11  ;;  %v25_v15 = vmax.f32 %v22_v12, %v23_v13  ;;  %v50_v26 = vsub.s32 0, %v49_v25  ;;  %p126_p0 = scmp.ne.s32.totalorder %s104_s1, %s125_s25  ;;  %p130_p1 = scmp.lt.s32.totalorder %s104_s1, %s104_s1 }
   0x8   :  { %p131_p2 = scmp.lt.s32.totalorder %s129_s26, %s125_s25 }
   0x9   :  { %v26_v16 = vmax.f32 %v24_v14, %v25_v15 }
   0xa   :  { %p132_p3 = por %p131_p2, %p130_p1 }
   0xb   :  { %v27_v17 = vsub.f32 %v12_v6, %v26_v16  ;;  %v29_v18 = vsub.f32 %v14_v8, %v26_v16  ;;  %v28_v19 = vsub.f32 %v13_v7, %v26_v16  ;;  %v30_v21 = vsub.f32 %v15_v9, %v26_v16 }
   0xc   :  { %vm91_vm2 = vcmp.eq.f32.partialorder %v26_v16, -inf  ;;  %p133_p4 = pnand %p132_p3, %p126_p0 }
   0xd   :  { %v31_v20 = vmul.f32 1.442695, %v27_v17  ;;  %v35_v22 = vmul.f32 1.442695, %v29_v18  ;;  %v33_v23 = vmul.f32 1.442695, %v28_v19 }
   0xe   :  { %v37_v24 = vmul.f32 1.442695, %v30_v21 }
   0xf   :  { %115 = vpow2.f32 %v31_v20 }
  0x10   :  { %117 = vpow2.f32 %v35_v22 }
  0x11   :  { %119 = vpow2.f32 %v33_v23 }
  0x12   :  { %121 = vpow2.f32 %v37_v24 }
  0x19   :  { %v116_v30 = vpop.eup %115 }
  0x1a   :  { %v118_v31 = vpop.eup %117 }
  0x1b   :  { %v120_v33 = vpop.eup %119 }
  0x1c   :  { %v122_v39 = vpop.eup %121 }
  0x81   :  { %v64_v27 = vpop.permute.xlu1 %63  ;;  %v46_v28 = vpop.permute.xlu0 %45 }
  0x82   :  { %v51_v29 = vrot.slane %v46_v28, %v50_v26  ;;  %v69_v32 = vrot.slane %v64_v27, %v50_v26 }
  0x84   :  { %v79_v36 = vmul.f32 %v116_v30, %v51_v29  ;;  %v81_v40 = vmul.f32 %v118_v31, %v69_v32 }
  0x85   :  { %v73_v34 = vpop.permute.xlu1 %72  ;;  %v55_v35 = vpop.permute.xlu0 %54 }
  0x86   :  { %v78_v37 = vrot.slane %v73_v34, %v50_v26  ;;  %v60_v38 = vrot.slane %v55_v35, %v50_v26  ;;  %v84_v42 = vsel %vm83_vm1, %v79_v36, 0.0  ;;  %v87_v46 = vsel %vm83_vm1, %v81_v40, 0.0 }
  0x88   :  { %v80_v41 = vmul.f32 %v120_v33, %v60_v38  ;;  %v82_v43 = vmul.f32 %v122_v39, %v78_v37 }
  0x8a   :  { %v85_v44 = vsel %vm83_vm1, %v80_v41, 0.0  ;;  %v89_v48 = vsel %vm83_vm1, %v82_v43, 0.0 }
  0x8b   :  { %v86_v45 = vadd.f32 %v85_v44, %v84_v42 }
  0x8d   :  { %v88_v47 = vadd.f32 %v87_v46, %v86_v45 }
  0x8f   :  { %v90_v49 = vadd.f32 %v89_v48, %v88_v47 }
  0x91   :  { %123 = vlog2.f32 %v90_v49 }
  0x9b   :  { %v124_v50 = vpop.eup %123 }
  0x9c   :  { %v93_v51 = vmul.f32 0.6931472, %v124_v50 }
  0x9e   :  { %v94_v52 = vadd.f32 %v93_v51, %v26_v16 }
  0xa0   :  { %v95_v53 = vsel %vm91_vm2, -inf, %v94_v52 }
  0xa1   :  { %96 = vst [vmem:[#allocation2] sm:$0x1] %v95_v53 }
  0xa2   :  { %136 = shalt.err (!%p133_p4)
}
  0xa3   :  { %s137_s29 = scalar_lea.hbm %s204_s2, 16 }
  0xa4   :  { %p138_p5 = scmp.ne.s32.totalorder %s204_s2, %s137_s29  ;;  %p141_p6 = scmp.lt.u32.totalorder %s137_s29, %s204_s2 }
  0xa6   :  { %p143_p7 = pnand %p141_p6, %p138_p5 }
  0xa8   :  { %146 = shalt.err (!%p143_p7)
}
  0xa9   :  { %106 = dma.vmem_to_hbm [thread:$0]  %s104_s1, 16, %s204_s2, [#allocation3]  }
  0xaa   :  { %147 = dma.done.wait [#allocation3], 16  }
  0xab   :  { %148 = vsyncadd [#allocation3], 4294967280 }
  0xac   :  { %110 = vsyncpa [#allocation3], 1 }

</bundles_post_ra>
